<compile_context>
chip_gen: v7x
topology: tpu7x:2x2x1
jax: 0.10.0
libtpu: 0.0.40
codegen_flags: <defaults>
</compile_context>

<pallas_src>
import functools
import math

import numpy as np
import jax
import jax.numpy as jnp
from jax.experimental import pallas as pl
from jax.experimental.pallas import tpu as pltpu


# --------------------------- VMEM budget -------------------------------------

def _vmem_limit_bytes():
    """~75% of the detected part's VMEM (v7x ~48 MiB, v5e/v6e ~96 MiB)."""
    cap = 64 * 1024 * 1024  # conservative fallback (v7x per-TC capacity)
    try:
        info = pltpu.get_tpu_info()
        cap = getattr(info, "vmem_capacity_bytes", None) or cap
    except Exception:
        pass
    return int(cap) * 3 // 4


_VMEM_LIMIT = _vmem_limit_bytes()


# ----------------------------- tiled linear kernels --------------------------

def _pick_tile(dim, target, align):
    """Largest `align`-aligned tile <= target that divides dim, else full dim."""
    if dim <= target:
        return dim
    t = (target // align) * align
    while t >= align:
        if dim % t == 0:
            return t
        t -= align
    # TODO(synk): pad + pl.cdiv grid for dims with no aligned divisor.
    return dim


def _linear_kernel_acc(x_ref, w_ref, b_ref, o_ref, acc_ref):
    """bf16-output path: f32 accumulator scratch, bias added on the last K tile."""
    k = pl.program_id(2)

    @pl.when(k == 0)
    def _init():
        acc_ref[...] = jnp.zeros_like(acc_ref)

    acc_ref[...] += jnp.dot(x_ref[...].astype(jnp.bfloat16),
                            w_ref[...].astype(jnp.bfloat16),
                            preferred_element_type=jnp.float32)

    @pl.when(k == pl.num_programs(2) - 1)
    def _finalize():
        o_ref[...] = (acc_ref[...] + b_ref[...]).astype(o_ref.dtype)


def _linear_kernel_f32out(x_ref, w_ref, b_ref, o_ref):
    """f32-output path: accumulate directly into the VMEM-resident output block."""
    k = pl.program_id(2)

    @pl.when(k == 0)
    def _init():
        o_ref[...] = jnp.zeros_like(o_ref)

    o_ref[...] += jnp.dot(x_ref[...].astype(jnp.bfloat16),
                          w_ref[...].astype(jnp.bfloat16),
                          preferred_element_type=jnp.float32)

    @pl.when(k == pl.num_programs(2) - 1)
    def _finalize():
        o_ref[...] += b_ref[...]


def pallas_linear(x, w, b, *, out_dtype=None, tm=512, tn=512, tk=1024):
    """y = x @ w + b (bf16 MXU operands, f32 accumulation), K-tiled."""
    M, K = x.shape
    N = w.shape[1]
    out_dtype = out_dtype if out_dtype is not None else x.dtype
    tm = _pick_tile(M, tm, 8)       # sublane tile
    tn = _pick_tile(N, tn, 128)     # lane tile (output / weight)
    tk = _pick_tile(K, tk, 128)     # lane tile (activation)
    grid = (M // tm, N // tn, K // tk)

    common = dict(
        out_shape=jax.ShapeDtypeStruct((M, N), out_dtype),
        grid=grid,
        in_specs=[
            pl.BlockSpec((tm, tk), lambda i, j, k: (i, k)),
            pl.BlockSpec((tk, tn), lambda i, j, k: (k, j)),
            pl.BlockSpec((1, tn), lambda i, j, k: (0, j)),
        ],
        out_specs=pl.BlockSpec((tm, tn), lambda i, j, k: (i, j)),
        compiler_params=pltpu.CompilerParams(
            dimension_semantics=("parallel", "parallel", "arbitrary"),
            vmem_limit_bytes=_VMEM_LIMIT,
        ),
    )
    b2 = b.reshape(1, N).astype(jnp.float32)
    if np.dtype(out_dtype) == np.dtype(np.float32):
        return pl.pallas_call(_linear_kernel_f32out, **common)(x, w, b2)
    return pl.pallas_call(
        _linear_kernel_acc,
        scratch_shapes=[pltpu.VMEM((tm, tn), jnp.float32)],
        **common,
    )(x, w, b2)


# --------------------- attention kernel (rotary fused in) ---------------------

def _attn_core(q, k, v, cos_q, sin_q, cos_k, sin_k, rot, o_ref, *,
               heads, head_size):
    """Causal attention over one (T, heads*head_size) slab of q/k/v."""
    T = q.shape[0]

    # Rotary (1/sqrt(D) scale pre-folded into cos_q/sin_q host-side).
    # rotate_half is a constant block-diagonal (slab, slab) bf16 matmul (MXU).
    # TODO(synk): if bundle dumps show the kernel MXU-bound, switch this to
    # pltpu.roll on the contiguous rot_ndims slice (XLU slot) instead.
    q_rot = jnp.dot(q, rot, preferred_element_type=jnp.float32)
    k_rot = jnp.dot(k, rot, preferred_element_type=jnp.float32)
    qf = q.astype(jnp.float32) * cos_q + q_rot * sin_q      # already * scale
    kf = k.astype(jnp.float32) * cos_k + k_rot * sin_k
    qb = qf.astype(jnp.bfloat16)
    kb = kf.astype(jnp.bfloat16)

    # Causal mask: built once per grid step, shared across the in-block heads.
    row = jax.lax.broadcasted_iota(jnp.int32, (T, T), 0)
    col = jax.lax.broadcasted_iota(jnp.int32, (T, T), 1)
    causal = col <= row
    neg = jnp.float32(-1e30)   # finite sentinel (NaN-safe: diag always unmasked)

    outs = []
    for h in range(heads):     # small: 1-2 heads per lane-aligned slab
        sl = slice(h * head_size, (h + 1) * head_size)
        s = jax.lax.dot_general(qb[:, sl], kb[:, sl], (((1,), (1,)), ((), ())),
                                preferred_element_type=jnp.float32)
        s = jnp.where(causal, s, neg)
        m = jnp.max(s, axis=-1, keepdims=True)
        p = jnp.exp(s - m)
        denom = jnp.sum(p, axis=-1, keepdims=True)
        out = jnp.dot(p.astype(jnp.bfloat16), v[:, sl],
                      preferred_element_type=jnp.float32)
        # Normalize after PV: (T, D) multiply, approx reciprocal on the EUP.
        outs.append(out * pl.reciprocal(denom, approx=True))

    slab = outs[0] if heads == 1 else jnp.concatenate(outs, axis=-1)
    o_ref[...] = slab.astype(o_ref.dtype)   # single lane-dense slab store


def _attn_kernel_grouped(q_ref, k_ref, v_ref, cq_ref, sq_ref, ck_ref, sk_ref,
                         rot_ref, o_ref, *, heads, head_size):
    _attn_core(q_ref[...], k_ref[...], v_ref[...],
               cq_ref[...], sq_ref[...], ck_ref[...], sk_ref[...],
               rot_ref[...], o_ref, heads=heads, head_size=head_size)


def _attn_kernel_fused(qkv_ref, cq_ref, sq_ref, ck_ref, sk_ref, rot_ref, o_ref,
                       *, heads, head_size):
    n = heads * head_size
    _attn_core(qkv_ref[:, :n], qkv_ref[:, n:2 * n], qkv_ref[:, 2 * n:3 * n],
               cq_ref[...], sq_ref[...], ck_ref[...], sk_ref[...],
               rot_ref[...], o_ref, heads=heads, head_size=head_size)


def _choose_head_block(n_attn, head_size):
    """Lane-dense head slab: smallest multiple of head_size and 128 that divides
    n_attn; falls back to all heads (full n_attn) for small/awkward shapes."""
    g = (head_size * 128) // math.gcd(head_size, 128)   # lcm(head_size, 128)
    if n_attn % g == 0 and g < n_attn:
        return g
    return n_attn


def pallas_causal_attention(qkv, prep):
    """Causal attention on fused (B, T, 3*n_attn) QKV -> (B, T, n_attn)."""
    B, T, three_n = qkv.shape
    n_head, head_size = prep["n_head"], prep["head_size"]
    n_attn = n_head * head_size
    width = prep["width"]
    heads_per_block = width // head_size
    tables = (prep["cos_q"], prep["sin_q"], prep["cos_k"], prep["sin_k"],
              prep["rot"])
    out_shape = jax.ShapeDtypeStruct((B, T, n_attn), qkv.dtype)

    # TODO(synk): for long T add flash-style q/kv tiling with online softmax and
    # causal tile skipping (earlier threshold on v7x's 64 MiB VMEM).
    if width == n_attn:
        # All heads in one block (toy / non-128-multiple n_attn): grid over B.
        tmap = lambda b: (0, 0)
        table_specs = [pl.BlockSpec((T, width), tmap) for _ in range(4)] + \
                      [pl.BlockSpec((width, width), tmap)]
        kern = functools.partial(_attn_kernel_fused,
                                 heads=heads_per_block, head_size=head_size)
        return pl.pallas_call(
            kern, out_shape=out_shape, grid=(B,),
            in_specs=[pl.BlockSpec((None, T, three_n), lambda b: (b, 0, 0))]
                     + table_specs,
            out_specs=pl.BlockSpec((None, T, n_attn), lambda b: (b, 0, 0)),
            compiler_params=pltpu.CompilerParams(
                dimension_semantics=("parallel",),
                vmem_limit_bytes=_VMEM_LIMIT),
        )(qkv, *tables)

    # Lane-aligned head groups: grid over (batch, group); q/k/v blocks are
    # 128-multiple slabs of the single fused qkv tensor (no extra HBM copies).
    G = n_attn // width
    tmap = lambda b, g: (0, 0)
    table_specs = [pl.BlockSpec((T, width), tmap) for _ in range(4)] + \
                  [pl.BlockSpec((width, width), tmap)]
    kern = functools.partial(_attn_kernel_grouped,
                             heads=heads_per_block, head_size=head_size)
    return pl.pallas_call(
        kern, out_shape=out_shape, grid=(B, G),
        in_specs=[
            pl.BlockSpec((None, T, width), lambda b, g: (b, 0, g)),          # q
            pl.BlockSpec((None, T, width), lambda b, g: (b, 0, G + g)),      # k
            pl.BlockSpec((None, T, width), lambda b, g: (b, 0, 2 * G + g)),  # v
        ] + table_specs,
        out_specs=pl.BlockSpec((None, T, width), lambda b, g: (b, 0, g)),
        compiler_params=pltpu.CompilerParams(
            dimension_semantics=("parallel", "parallel"),
            vmem_limit_bytes=_VMEM_LIMIT),
    )(qkv, qkv, qkv, *tables)


# --------------------------- host-side preparation ----------------------------

def _rotary_tables(T, head_size, rot_ndims, heads_per_block, scale,
                   base=10000.0):
    """cos/sin extended over the full head dim (identity on pass dims), tiled
    across the head block; rotate_half as a block-diagonal constant matrix;
    1/sqrt(head_size) folded into the q-side tables."""
    inv_freq = 1.0 / (base ** (jnp.arange(0, rot_ndims, 2, dtype=jnp.float32)
                               / rot_ndims))
    t = jnp.arange(T, dtype=jnp.float32)
    freqs = jnp.einsum("i,j->ij", t, inv_freq)            # (T, rot//2)
    emb = jnp.concatenate([freqs, freqs], axis=-1)        # (T, rot)
    pad = head_size - rot_ndims
    cos = jnp.concatenate([jnp.cos(emb), jnp.ones((T, pad), jnp.float32)], -1)
    sin = jnp.concatenate([jnp.sin(emb), jnp.zeros((T, pad), jnp.float32)], -1)

    half = rot_ndims // 2
    rot = jnp.zeros((head_size, head_size), jnp.float32)
    # (x @ rot)[:, :half]    = -x[:, half:rot]
    rot = rot.at[jnp.arange(half) + half, jnp.arange(half)].set(-1.0)
    # (x @ rot)[:, half:rot] =  x[:, :half]
    rot = rot.at[jnp.arange(half), jnp.arange(half) + half].set(1.0)

    # Tile per-head tables across the head block, block-diag the rotate matrix.
    cos = jnp.tile(cos, (1, heads_per_block))
    sin = jnp.tile(sin, (1, heads_per_block))
    rot = jnp.kron(jnp.eye(heads_per_block, dtype=jnp.float32), rot)
    return (cos * scale, sin * scale, cos, sin, rot.astype(jnp.bfloat16))


def prepare_mha_rotary(params, n_head, T):
    """One-time parameter prep: fused/bf16 weights, rotary tables, head blocking."""
    n_attn = params["Wq"].shape[1]
    head_size = n_attn // n_head
    rot_ndims = int(head_size * 0.5)
    width = _choose_head_block(n_attn, head_size)
    heads_per_block = width // head_size
    scale = 1.0 / math.sqrt(head_size)

    cos_q, sin_q, cos_k, sin_k, rot = _rotary_tables(
        T, head_size, rot_ndims, heads_per_block, scale)

    return dict(
        w_qkv=jnp.concatenate([params["Wq"], params["Wk"], params["Wv"]],
                              axis=1).astype(jnp.bfloat16),
        b_qkv=jnp.concatenate([params["bq"], params["bk"], params["bv"]],
                              axis=0),
        w_o=params["Wo"].astype(jnp.bfloat16),
        b_o=params["bo"],
        cos_q=cos_q, sin_q=sin_q, cos_k=cos_k, sin_k=sin_k, rot=rot,
        n_head=n_head, head_size=head_size, width=width,
    )


# ------------------------------ full forward ----------------------------------

def mha_rotary_forward(x, prep):
    # TODO(synk): time_shift=False path only (module default).
    B, T, C = x.shape
    n_attn = prep["n_head"] * prep["head_size"]

    # Fused QKV projection: x read from HBM once; output stored bf16.
    qkv = pallas_linear(x.reshape(B * T, C), prep["w_qkv"], prep["b_qkv"],
                        out_dtype=jnp.bfloat16)
    qkv = qkv.reshape(B, T, 3 * n_attn)                   # free reshape

    o = pallas_causal_attention(qkv, prep)                # (B, T, n_attn) bf16

    y = pallas_linear(o.reshape(B * T, n_attn), prep["w_o"], prep["b_o"],
                      out_dtype=jnp.float32)
    return y.reshape(B, T, -1)


# --------------------------- pure-JAX reference -------------------------------

def _ref_rotate_half(x):
    half = x.shape[-1] // 2
    return jnp.concatenate([-x[..., half:], x[..., :half]], axis=-1)


def _ref_rotary_cos_sin(seq_len, dim, base=10000.0):
    inv_freq = 1.0 / (base ** (jnp.arange(0, dim, 2, dtype=jnp.float32) / dim))
    t = jnp.arange(seq_len, dtype=jnp.float32)
    freqs = jnp.einsum("i,j->ij", t, inv_freq)
    emb = jnp.concatenate([freqs, freqs], axis=-1)
    return jnp.cos(emb), jnp.sin(emb)


def mha_rotary_reference(x, params, n_head):
    B, T, C = x.shape
    n_attn = params["Wq"].shape[1]
    head_size = n_attn // n_head
    rot = int(head_size * 0.5)

    q = (x @ params["Wq"] + params["bq"]).reshape(
        B, T, n_head, head_size).transpose(0, 2, 1, 3)
    k = (x @ params["Wk"] + params["bk"]).reshape(
        B, T, n_head, head_size).transpose(0, 2, 1, 3)
    v = (x @ params["Wv"] + params["bv"]).reshape(
        B, T, n_head, head_size).transpose(0, 2, 1, 3)

    q_rot, q_pass = q[..., :rot], q[..., rot:]
    k_rot, k_pass = k[..., :rot], k[..., rot:]
    cos, sin = _ref_rotary_cos_sin(T, rot)
    q_rot = q_rot * cos + _ref_rotate_half(q_rot) * sin
    k_rot = k_rot * cos + _ref_rotate_half(k_rot) * sin
    q = jnp.concatenate([q_rot, q_pass], axis=-1)
    k = jnp.concatenate([k_rot, k_pass], axis=-1)

    att = (q @ jnp.swapaxes(k, -2, -1)) * (1.0 / math.sqrt(head_size))
    mask = jnp.tril(jnp.ones((T, T), dtype=bool))
    att = jnp.where(mask, att, -jnp.inf)
    att = jax.nn.softmax(att, axis=-1)
    o = (att @ v).transpose(0, 2, 1, 3).reshape(B, T, n_attn)
    return (o @ params["Wo"] + params["bo"]).reshape(B, T, -1)


# ---------------------------------- main --------------------------------------

if __name__ == "__main__":

    def init_linear(k, fan_in, fan_out):
        # nn.Linear default: U(-1/sqrt(fan_in), 1/sqrt(fan_in)); stored as (in, out).
        bound = 1.0 / math.sqrt(fan_in)
        kw, kb = jax.random.split(k)
        w = jax.random.uniform(kw, (fan_in, fan_out), jnp.float32, -bound, bound)
        b = jax.random.uniform(kb, (fan_out,), jnp.float32, -bound, bound)
        return w, b

    def run_case(key, B, T, n_embd, n_attn, n_head):
        ks = jax.random.split(key, 5)
        params = {}
        params["Wq"], params["bq"] = init_linear(ks[0], n_embd, n_attn)
        params["Wk"], params["bk"] = init_linear(ks[1], n_embd, n_attn)
        params["Wv"], params["bv"] = init_linear(ks[2], n_embd, n_attn)
        params["Wo"], params["bo"] = init_linear(ks[3], n_attn, n_embd)
        x = jax.random.normal(ks[4], (B, T, n_embd), dtype=jnp.float32)

        prep = prepare_mha_rotary(params, n_head, T)      # hoisted, done once
        y = mha_rotary_forward(x, prep)
        jax.block_until_ready(y)

        y_ref = mha_rotary_reference(x, params, n_head)
        assert y.shape == (B, T, n_embd)
        # bf16 MXU operands + approx reciprocal -> looser tolerance than f32.
        assert jnp.allclose(y, y_ref, atol=3e-2, rtol=3e-2), (
            f"Pallas output mismatch (max abs err "
            f"{jnp.max(jnp.abs(y - y_ref)):.4f})")

    key = jax.random.PRNGKey(0)
    k1, k2 = jax.random.split(key)
    # Small config (all heads in one block, fallback path).
    run_case(k1, B=2, T=8, n_embd=32, n_attn=32, n_head=2)
    # Lane-aligned head-group path (head_size=64 -> 128-lane slabs, grid (B, 2)).
    run_case(k2, B=2, T=8, n_embd=64, n_attn=256, n_head=4)

    print("KERNEL_OK")
</pallas_src>

<mosaic_0001>
module attributes {stable_mosaic.version = 11 : i64} {
  func.func @_linear_kernel_acc(%arg0: i32, %arg1: i32, %arg2: i32, %arg3: memref<16x32xf32, #tpu.memory_space<vmem>>, %arg4: memref<32x96xbf16, #tpu.memory_space<vmem>>, %arg5: memref<1x96xf32, #tpu.memory_space<vmem>>, %arg6: memref<16x96xbf16, #tpu.memory_space<vmem>>, %arg7: memref<16x96xf32, #tpu.memory_space<vmem>>) attributes {dimension_semantics = [#tpu.dimension_semantics<parallel>, #tpu.dimension_semantics<parallel>, #tpu.dimension_semantics<arbitrary>], iteration_bounds = array<i64: 1, 1, 1>, scalar_prefetch = 0 : i64, scratch_operands = 1 : i64, tpu.core_type = #tpu.core_type<tc>, window_params = [{transform_indices = @transform_0, window_bounds = array<i64: 16, 32>}, {transform_indices = @transform_1, window_bounds = array<i64: 32, 96>}, {transform_indices = @transform_2, window_bounds = array<i64: 1, 96>}, {transform_indices = @transform_3, window_bounds = array<i64: 16, 96>}]} {
    %c0_i32 = arith.constant 0 : i32
    %0 = arith.cmpi eq, %arg2, %c0_i32 : i32
    %1 = arith.extui %0 : i1 to i32
    %c0_i32_0 = arith.constant 0 : i32
    %2 = arith.cmpi ne, %1, %c0_i32_0 : i32
    scf.if %2 {
      %cst_10 = arith.constant 0.000000e+00 : f32
      %13 = vector.broadcast %cst_10 : f32 to vector<16x96xf32>
      %c0_11 = arith.constant 0 : index
      %c0_12 = arith.constant 0 : index
      %14 = vector.load %arg7[%c0_11, %c0_12] : memref<16x96xf32, #tpu.memory_space<vmem>>, vector<16x96xf32>
      tpu.vector_store %arg7[%c0_11, %c0_12], %13 {strides = array<i32>} : memref<16x96xf32, #tpu.memory_space<vmem>>, vector<16x96xf32>,
    } else {
    }
    %c0 = arith.constant 0 : index
    %c0_1 = arith.constant 0 : index
    %3 = vector.load %arg7[%c0, %c0_1] : memref<16x96xf32, #tpu.memory_space<vmem>>, vector<16x96xf32>
    %c0_2 = arith.constant 0 : index
    %c0_3 = arith.constant 0 : index
    %4 = vector.load %arg3[%c0_2, %c0_3] : memref<16x32xf32, #tpu.memory_space<vmem>>, vector<16x32xf32>
    %5 = arith.truncf %4 : vector<16x32xf32> to vector<16x32xbf16>
    %c0_4 = arith.constant 0 : index
    %c0_5 = arith.constant 0 : index
    %6 = vector.load %arg4[%c0_4, %c0_5] : memref<32x96xbf16, #tpu.memory_space<vmem>>, vector<32x96xbf16>
    %cst = arith.constant dense<0.000000e+00> : vector<16x96xf32>
    %7 = tpu.matmul %5, %6, %cst {dimension_numbers = #tpu.dot_dimension_numbers<[1], [0], [0], [1], [0, 0, 1, 1], [], []>} : vector<16x32xbf16>, vector<32x96xbf16>, vector<16x96xf32> -> vector<16x96xf32>
    %8 = arith.addf %3, %7 : vector<16x96xf32>
    %c0_6 = arith.constant 0 : index
    %c0_7 = arith.constant 0 : index
    %9 = vector.load %arg7[%c0_6, %c0_7] : memref<16x96xf32, #tpu.memory_space<vmem>>, vector<16x96xf32>
    tpu.vector_store %arg7[%c0_6, %c0_7], %8 {strides = array<i32>} : memref<16x96xf32, #tpu.memory_space<vmem>>, vector<16x96xf32>,
    %c0_i32_8 = arith.constant 0 : i32
    %10 = arith.cmpi eq, %arg2, %c0_i32_8 : i32
    %11 = arith.extui %10 : i1 to i32
    %c0_i32_9 = arith.constant 0 : i32
    %12 = arith.cmpi ne, %11, %c0_i32_9 : i32
    scf.if %12 {
      %c0_10 = arith.constant 0 : index
      %c0_11 = arith.constant 0 : index
      %13 = vector.load %arg7[%c0_10, %c0_11] : memref<16x96xf32, #tpu.memory_space<vmem>>, vector<16x96xf32>
      %c0_12 = arith.constant 0 : index
      %c0_13 = arith.constant 0 : index
      %14 = vector.load %arg5[%c0_12, %c0_13] : memref<1x96xf32, #tpu.memory_space<vmem>>, vector<1x96xf32>
      %15 = vector.broadcast %14 : vector<1x96xf32> to vector<16x96xf32>
      %16 = arith.addf %13, %15 : vector<16x96xf32>
      %17 = arith.truncf %16 : vector<16x96xf32> to vector<16x96xbf16>
      %c0_14 = arith.constant 0 : index
      %c0_15 = arith.constant 0 : index
      %18 = vector.load %arg6[%c0_14, %c0_15] : memref<16x96xbf16, #tpu.memory_space<vmem>>, vector<16x96xbf16>
      tpu.vector_store %arg6[%c0_14, %c0_15], %17 {strides = array<i32>} : memref<16x96xbf16, #tpu.memory_space<vmem>>, vector<16x96xbf16>,
    } else {
    }
    return
  }
  func.func @transform_0(%arg0: i32, %arg1: i32, %arg2: i32) -> (i32, i32) {
    %c0_i32 = arith.constant 0 : i32
    return %arg0, %arg2 : i32, i32
  }
  func.func @transform_1(%arg0: i32, %arg1: i32, %arg2: i32) -> (i32, i32) {
    %c0_i32 = arith.constant 0 : i32
    return %arg2, %arg1 : i32, i32
  }
  func.func @transform_2(%arg0: i32, %arg1: i32, %arg2: i32) -> (i32, i32) {
    %c0_i32 = arith.constant 0 : i32
    %c0_i32_0 = arith.constant 0 : i32
    return %c0_i32, %arg1 : i32, i32
  }
  func.func @transform_3(%arg0: i32, %arg1: i32, %arg2: i32) -> (i32, i32) {
    %c0_i32 = arith.constant 0 : i32
    return %arg0, %arg1 : i32, i32
  }
}

</mosaic_0001>

<bundles_post_ra>
// kernel: tpu_custom_call.1
= control target key start
LH: loop header
LB: loop body
LE: loop exit
PB: predicated region body
PF: predicated region fallthrough
CT: control target
= control target key end

     0   :  { %8 = vsyncpa [#allocation4], 0  ;;  %s345_s0 = inlined_call_operand.hbm [shape: f32[16,32], index: 0, kind: input, shape index: {}]   ;;  %s346_s1 = inlined_call_operand.hbm [shape: bf16[32,96], index: 1, kind: input, shape index: {}]   ;;  %s347_s2 = inlined_call_operand.vmem [shape: f32[1,96], index: 2, kind: input, shape index: {}]   ;;  %s348_s3 = inlined_call_operand.hbm [shape: bf16[16,96], index: 3, kind: output, shape index: {}]  }
   0x1   :  { %9 = vsyncpa [#allocation7], 0 }
   0x2   :  { %10 = vsyncpa [#allocation5], 0  ;;  %s267_s12 = smov [#allocation3]   ;;  %s195_s16 = scalar_lea.hbm %s345_s0, 256 }
   0x3   :  { %s16_s13 = sshll.u32 %s267_s12, 4  ;;  %p196_p0 = scmp.ne.s32.totalorder %s345_s0, %s195_s16  ;;  %s17_s13 = int_to_ptr.vmem [resolvable:$true] %s16_s13 }
   0x4   :  { %p199_p1 = scmp.lt.u32.totalorder %s195_s16, %s345_s0 }
   0x6   :  { %p201_p2 = pnand %p199_p1, %p196_p0 }
   0x8   :  { %204 = shalt.err (!%p201_p2)
}
   0x9   :  { %s205_s21 = scalar_lea.vmem %s17_s13, 256  ;;  %p210_p4 = scmp.lt.s32.totalorder %s17_s13, %s17_s13 }
   0xa   :  { %p206_p3 = scmp.ne.s32.totalorder %s17_s13, %s205_s21  ;;  %p211_p5 = scmp.lt.s32.totalorder %s205_s21, %s205_s21 }
   0xc   :  { %p212_p6 = por %p211_p5, %p210_p4 }
   0xe   :  { %p213_p7 = pnand %p212_p6, %p206_p3 }
  0x10   :  { %216 = shalt.err (!%p213_p7)
}
  0x11   :  { %s268_s22 = smov 128   ;;  %s269_s23 = smov 8  }
  0x12   :  { %22 = dma.hbm_to_vmem [thread:$0]  %s345_s0, 256, %s17_s13, [#allocation4], %s268_s22, %s268_s22, %s269_s23  }
  0x13   :  { %s270_s26 = smov [#allocation6]   ;;  %s217_s30 = scalar_lea.hbm %s346_s1, 256 }
  0x14   :  { %s28_s27 = sshll.u32 %s270_s26, 4  ;;  %p218_p8 = scmp.ne.s32.totalorder %s346_s1, %s217_s30  ;;  %s29_s27 = int_to_ptr.vmem [resolvable:$true] %s28_s27 }
  0x15   :  { %p221_p9 = scmp.lt.u32.totalorder %s217_s30, %s346_s1 }
  0x17   :  { %p223_p10 = pnand %p221_p9, %p218_p8 }
  0x19   :  { %226 = shalt.err (!%p223_p10)
}
  0x1a   :  { %s227_s8 = scalar_lea.vmem %s29_s27, 256  ;;  %p232_p12 = scmp.lt.s32.totalorder %s29_s27, %s29_s27 }
  0x1b   :  { %p228_p11 = scmp.ne.s32.totalorder %s29_s27, %s227_s8  ;;  %p233_p13 = scmp.lt.s32.totalorder %s227_s8, %s227_s8 }
  0x1d   :  { %p234_p0 = por %p233_p13, %p232_p12 }
  0x1f   :  { %p235_p1 = pnand %p234_p0, %p228_p11 }
  0x21   :  { %238 = shalt.err (!%p235_p1)
}
  0x22   :  { %s271_s0 = smov 64   ;;  %s272_s9 = smov 4  }
  0x23   :  { %34 = dma.hbm_to_vmem [thread:$0]  %s346_s1, 256, %s29_s27, [#allocation7], %s271_s0, %s271_s0, %s272_s9  }
  0x24   :  { %261 = dma.done.wait [#allocation4], 256  }
  0x25   :  { %262 = vsyncadd [#allocation4], 4294967040 }
  0x26   :  { %263 = dma.done.wait [#allocation7], 256  }
  0x27   :  { %264 = vsyncadd [#allocation7], 4294967040  ;;  %vm48_vm0 = vcmask 785408   ;;  %v273_v0 = vmov 0.0   ;;  %vm274_vm1 = vmmov 0   ;;  %v193_v1 = vld [vmem:[#allocation6] sm:$0xff]  }
  0x28   :  { %49 = vst.msk [vmem:[#allocation2] sm:$0xff] %vm48_vm0, %v273_v0  ;;  %50 = vst.msk [vmem:[#allocation2 + $0x8] sm:$0xff] %vm48_vm0, %v273_v0  ;;  %176 = vmatprep.subr.bf16.mxu0 %v273_v0  ;;  %180 = vmatprep.mubr.msk.bf16.mxu0 %vm274_vm1, %v273_v0  ;;  %v194_v2 = vld [vmem:[#allocation6 + $0x8] sm:$0xff]   ;;  %v53_v3 = vld [vmem:[#allocation3] sm:$0xff]  ;;  %vm72_vm2 = vcmask 261120   ;;  %vm144_vm3 = vcmask 781312  }
  0x29   :  { %177 = vmatpush3.bf16.msra.mxu0 %v193_v1  ;;  %v54_v4 = vld [vmem:[#allocation3 + $0x8] sm:$0xff]  ;;  %v168_v14 = vld [vmem:[%s347_s2] ss:$0 sm:$0xff]  ;;  %s275_s13 = smov [#allocation8]  }
  0x2a   :  { %178 = vmatprep.subr.bf16.mxu0 %v273_v0  ;;  %v55_v5 = vpack.c.bf16 %v54_v4, %v53_v3  ;;  %s152_s14 = sshll.u32 %s275_s13, 4  ;;  %s153_s14 = int_to_ptr.vmem [resolvable:$true] %s152_s14 }
  0x2b   :  { %s239_s15 = scalar_lea.vmem %s153_s14, 128  ;;  %p244_p3 = scmp.lt.s32.totalorder %s153_s14, %s153_s14 }
  0x2c   :  { %p240_p2 = scmp.ne.s32.totalorder %s153_s14, %s239_s15  ;;  %p245_p4 = scmp.lt.s32.totalorder %s239_s15, %s239_s15 }
  0x2d   :  { %179 = vmatpush3.bf16.msra.mxu0 %v194_v2 }
  0x2e   :  { %p246_p5 = por %p245_p4, %p244_p3 }
  0x2f   :  { %v51_v6 = vld [vmem:[#allocation2] sm:$0xff]  ;;  %v52_v8 = vld [vmem:[#allocation2 + $0x8] sm:$0xff] }
  0x30   :  { %181 = vmatmul.mubr.msk.bf16.vlgmr.msra.gmra.mrb[0].mxu0 %vm72_vm2, %v55_v5  ;;  %p247_p6 = pnand %p246_p5, %p240_p2 }
 0x103   :  { %v110_v7 = vpop.f32.mrb[0].mxu0 }
 0x104   :  { %v117_v9 = vadd.f32 %v110_v7, %v51_v6  ;;  %v182_v10 = vpop.f32.mrb[1].mxu0 }
 0x105   :  { %v113_v11 = vpop.f32.mrb[2].mxu0 }
 0x106   :  { %120 = vst.msk [vmem:[#allocation2] sm:$0xff] %vm48_vm0, %v117_v9  ;;  %v118_v12 = vadd.f32 %v113_v11, %v52_v8  ;;  %v183_v13 = vpop.f32.mrb[3].mxu0 }
 0x108   :  { %121 = vst.msk [vmem:[#allocation2 + $0x8] sm:$0xff] %vm48_vm0, %v118_v12 }
 0x10d   :  { %v125_v15 = vld [vmem:[#allocation2] sm:$0xff] }
 0x10e   :  { %v134_v16 = vadd.f32 %v168_v14, %v125_v15 }
 0x10f   :  { %v126_v17 = vld [vmem:[#allocation2 + $0x8] sm:$0xff] }
 0x110   :  { %v135_v18 = vadd.f32 %v168_v14, %v126_v17  ;;  %v171_v19 = vpack.c.bf16 %v134_v16, %v134_v16 }
 0x112   :  { %v172_v20 = vpack.c.bf16 %v135_v18, %v135_v18  ;;  %145 = vst.msk [vmem:[#allocation8] sm:$0xf] %vm144_vm3, %v171_v19 }
 0x114   :  { %146 = vst.msk [vmem:[#allocation8 + $0x4] sm:$0xf] %vm144_vm3, %v172_v20 }
 0x115   :  { %250 = shalt.err (!%p247_p6)
}
 0x116   :  { %s251_s17 = scalar_lea.hbm %s348_s3, 128 }
 0x117   :  { %p252_p7 = scmp.ne.s32.totalorder %s348_s3, %s251_s17  ;;  %p255_p8 = scmp.lt.u32.totalorder %s251_s17, %s348_s3 }
 0x119   :  { %p257_p9 = pnand %p255_p8, %p252_p7 }
 0x11b   :  { %260 = shalt.err (!%p257_p9)
}
 0x11c   :  { %158 = dma.vmem_to_hbm [thread:$0]  %s153_s14, 128, %s348_s3, [#allocation5], %s271_s0, %s271_s0, %s272_s9  }
 0x11d   :  { %265 = dma.done.wait [#allocation5], 128  }
 0x11e   :  { %266 = vsyncadd [#allocation5], 4294967168 }
 0x11f   :  { %162 = vsyncpa [#allocation4], 1 }
 0x120   :  { %163 = vsyncpa [#allocation7], 1 }
 0x121   :  { %164 = vsyncpa [#allocation5], 1 }

</bundles_post_ra>
